<compile_context>
chip_gen: v5e
topology: v5e:2x2
jax: 0.10.0
libtpu: 0.0.40
codegen_flags: <defaults>
</compile_context>

<pallas_src>
import functools

import jax
import jax.numpy as jnp
from jax import lax
from jax.experimental import pallas as pl
from jax.experimental.pallas import tpu as pltpu

BN_EPS = 1e-5  # nn.BatchNorm2d default eps


def _pick_row_tile(out_rows, target):
    """Largest divisor of out_rows that is <= target (keeps per-step VMEM small)."""
    for t in range(min(target, out_rows), 0, -1):
        if out_rows % t == 0:
            return t
    return out_rows


def conv_bn_act_pallas(x, w, gamma, beta, mean, var, *, stride=1, row_tile=8):
    """x: (B, Cin, H, W) f32 NCHW.  w: (Cout, Cin, k, k).  Returns (B, Cout, Ho, Wo) f32."""
    B, Cin, H, W = x.shape
    Cout, wCin, k, k2 = w.shape
    assert wCin == Cin and k == k2
    s = stride
    p = k // 2
    Ho = (H + 2 * p - k) // s + 1
    Wo = (W + 2 * p - k) // s + 1
    Wp = W + 2 * p

    # ---- fold BN (eval mode) into conv weight / bias --------------------------------
    scale = gamma / jnp.sqrt(var + BN_EPS)
    w_f = w * scale[:, None, None, None]
    b_f = (beta - mean * scale).reshape(1, Cout).astype(jnp.float32)

    # im2col weight packing: row index = (ky*k + kx)*Cin + cin  (matches tap order).
    w_im2col = jnp.transpose(w_f, (2, 3, 1, 0)).reshape(k * k * Cin, Cout)
    w_im2col = w_im2col.astype(jnp.bfloat16)

    # ---- NCHW -> NHWC, zero-pad, bf16, row-tile with halo ----------------------------
    x_nhwc = jnp.transpose(x, (0, 2, 3, 1))                       # (B, H, W, Cin)
    x_pad = jnp.pad(x_nhwc, ((0, 0), (p, p), (p, p), (0, 0))).astype(jnp.bfloat16)

    TH = _pick_row_tile(Ho, row_tile)          # output rows per grid step
    RT = Ho // TH                              # row tiles per image
    TH_in = (TH - 1) * s + k                   # input rows needed per step (incl. halo)
    # Duplicate the (k - s)-row halo once in the wrapper so each grid step gets a
    # contiguous non-overlapping Blocked window (cheap: halo << tile).
    tiles = jnp.stack([x_pad[:, t * TH * s: t * TH * s + TH_in] for t in range(RT)],
                      axis=1)                                     # (B, RT, TH_in, Wp, Cin)
    tiles = tiles.reshape(B * RT, TH_in, Wp, Cin)

    def kernel(x_ref, w_ref, b_ref, o_ref):
        xt = x_ref[0]                                            # (TH_in, Wp, Cin) bf16
        taps = []
        for ky in range(k):
            for kx in range(k):
                if s == 1:
                    taps.append(xt[ky:ky + TH, kx:kx + Wo, :])   # static slice views
                else:
                    taps.append(xt[ky:ky + (TH - 1) * s + 1:s,
                                   kx:kx + (Wo - 1) * s + 1:s, :])
        # One lane-concatenated im2col slab -> ONE bf16 MXU matmul, f32 accumulate.
        slab = jnp.concatenate(taps, axis=-1).reshape(TH * Wo, k * k * Cin)
        acc = jnp.dot(slab, w_ref[...], preferred_element_type=jnp.float32)
        y = jnp.maximum(acc + b_ref[...], 0.0)                   # folded BN shift + ReLU
        o_ref[0] = y.reshape(TH, Wo, Cout)                       # lane-dense store

    out = pl.pallas_call(
        kernel,
        out_shape=jax.ShapeDtypeStruct((B * RT, TH, Wo, Cout), jnp.float32),
        grid=(B * RT,),
        in_specs=[
            pl.BlockSpec((1, TH_in, Wp, Cin), lambda n: (n, 0, 0, 0)),
            pl.BlockSpec((k * k * Cin, Cout), lambda n: (0, 0)),
            pl.BlockSpec((1, Cout), lambda n: (0, 0)),
        ],
        out_specs=pl.BlockSpec((1, TH, Wo, Cout), lambda n: (n, 0, 0, 0)),
        compiler_params=pltpu.CompilerParams(
            dimension_semantics=("parallel",),          # independent tiles -> megacore/2-TC
            vmem_limit_bytes=48 * 1024 * 1024),         # headroom, still < v7x 64 MiB physical
    )(tiles, w_im2col, b_f)

    # glue: (B*RT, TH, Wo, Cout) -> (B, Ho, Wo, Cout) -> NCHW
    out = out.reshape(B, Ho, Wo, Cout).transpose(0, 3, 1, 2)
    return out


# ---------------- pure-JAX reference (f32, un-fused BN) -------------------------------
def conv_bn_act_reference(x, w, gamma, beta, mean, var, *, stride=1):
    k = w.shape[-1]
    p = k // 2
    y = lax.conv_general_dilated(
        x, w, window_strides=(stride, stride), padding=((p, p), (p, p)),
        dimension_numbers=("NCHW", "OIHW", "NCHW"), precision=lax.Precision.HIGHEST)
    scale = gamma / jnp.sqrt(var + BN_EPS)
    shift = beta - mean * scale
    y = y * scale[None, :, None, None] + shift[None, :, None, None]
    return jnp.maximum(y, 0.0)


if __name__ == "__main__":
    B, Cin, H, W = 2, 4, 16, 16
    Cout, k, stride = 8, 3, 1

    key = jax.random.PRNGKey(0)
    kx, kw, kg, kb, km, kv = jax.random.split(key, 6)
    x = jax.random.normal(kx, (B, Cin, H, W), jnp.float32)
    w = 0.3 * jax.random.normal(kw, (Cout, Cin, k, k), jnp.float32)
    gamma = 1.0 + 0.1 * jax.random.normal(kg, (Cout,), jnp.float32)
    beta = 0.1 * jax.random.normal(kb, (Cout,), jnp.float32)
    mean = 0.1 * jax.random.normal(km, (Cout,), jnp.float32)
    var = 0.5 + jnp.abs(jax.random.normal(kv, (Cout,), jnp.float32))

    fn = jax.jit(functools.partial(conv_bn_act_pallas, stride=stride, row_tile=8))
    out = jax.block_until_ready(fn(x, w, gamma, beta, mean, var))

    ref = conv_bn_act_reference(x, w, gamma, beta, mean, var, stride=stride)
    assert out.shape == ref.shape == (B, Cout, H, W), out.shape
    err = float(jnp.max(jnp.abs(out - ref)))
    # bf16 MXU operands (per perf review) with f32 accumulation -> tolerance loosened
    # relative to a pure-f32 kernel; error stays far below this bound in practice.
    assert err < 5e-2, f"max abs error {err}"
    print("KERNEL_OK")
</pallas_src>

<mosaic_0001>
module attributes {stable_mosaic.version = 11 : i64} {
  func.func @kernel(%arg0: i32, %arg1: memref<1x10x18x4xbf16, #tpu.memory_space<vmem>>, %arg2: memref<36x8xbf16, #tpu.memory_space<vmem>>, %arg3: memref<1x8xf32, #tpu.memory_space<vmem>>, %arg4: memref<1x8x16x8xf32, #tpu.memory_space<vmem>>) attributes {dimension_semantics = [#tpu.dimension_semantics<parallel>], iteration_bounds = array<i64: 4>, scalar_prefetch = 0 : i64, scratch_operands = 0 : i64, tpu.core_type = #tpu.core_type<tc>, window_params = [{transform_indices = @transform_0, window_bounds = array<i64: 1, 10, 18, 4>}, {pipeline_mode = #tpu.pipeline_mode<synchronous>, transform_indices = @transform_1, window_bounds = array<i64: 36, 8>}, {pipeline_mode = #tpu.pipeline_mode<synchronous>, transform_indices = @transform_2, window_bounds = array<i64: 1, 8>}, {transform_indices = @transform_3, window_bounds = array<i64: 1, 8, 16, 8>}]} {
    %c0 = arith.constant 0 : index
    %c0_0 = arith.constant 0 : index
    %c0_1 = arith.constant 0 : index
    %c0_2 = arith.constant 0 : index
    %0 = vector.load %arg1[%c0, %c0_0, %c0_1, %c0_2] : memref<1x10x18x4xbf16, #tpu.memory_space<vmem>>, vector<1x10x18x4xbf16>
    %1 = vector.shape_cast %0 : vector<1x10x18x4xbf16> to vector<10x18x4xbf16>
    %2 = vector.extract_strided_slice %1 {offsets = [0, 0, 0], sizes = [8, 16, 4], strides = [1, 1, 1]} : vector<10x18x4xbf16> to vector<8x16x4xbf16>
    %3 = vector.extract_strided_slice %1 {offsets = [0, 1, 0], sizes = [8, 16, 4], strides = [1, 1, 1]} : vector<10x18x4xbf16> to vector<8x16x4xbf16>
    %4 = vector.extract_strided_slice %1 {offsets = [0, 2, 0], sizes = [8, 16, 4], strides = [1, 1, 1]} : vector<10x18x4xbf16> to vector<8x16x4xbf16>
    %5 = vector.extract_strided_slice %1 {offsets = [1, 0, 0], sizes = [8, 16, 4], strides = [1, 1, 1]} : vector<10x18x4xbf16> to vector<8x16x4xbf16>
    %6 = vector.extract_strided_slice %1 {offsets = [1, 1, 0], sizes = [8, 16, 4], strides = [1, 1, 1]} : vector<10x18x4xbf16> to vector<8x16x4xbf16>
    %7 = vector.extract_strided_slice %1 {offsets = [1, 2, 0], sizes = [8, 16, 4], strides = [1, 1, 1]} : vector<10x18x4xbf16> to vector<8x16x4xbf16>
    %8 = vector.extract_strided_slice %1 {offsets = [2, 0, 0], sizes = [8, 16, 4], strides = [1, 1, 1]} : vector<10x18x4xbf16> to vector<8x16x4xbf16>
    %9 = vector.extract_strided_slice %1 {offsets = [2, 1, 0], sizes = [8, 16, 4], strides = [1, 1, 1]} : vector<10x18x4xbf16> to vector<8x16x4xbf16>
    %10 = vector.extract_strided_slice %1 {offsets = [2, 2, 0], sizes = [8, 16, 4], strides = [1, 1, 1]} : vector<10x18x4xbf16> to vector<8x16x4xbf16>
    %11 = tpu.concatenate %2, %3, %4, %5, %6, %7, %8, %9, %10 in 2 : vector<8x16x4xbf16>, vector<8x16x4xbf16>, vector<8x16x4xbf16>, vector<8x16x4xbf16>, vector<8x16x4xbf16>, vector<8x16x4xbf16>, vector<8x16x4xbf16>, vector<8x16x4xbf16>, vector<8x16x4xbf16> -> vector<8x16x36xbf16>
    %12 = vector.shape_cast %11 : vector<8x16x36xbf16> to vector<128x36xbf16>
    %c0_3 = arith.constant 0 : index
    %c0_4 = arith.constant 0 : index
    %13 = vector.load %arg2[%c0_3, %c0_4] : memref<36x8xbf16, #tpu.memory_space<vmem>>, vector<36x8xbf16>
    %cst = arith.constant dense<0.000000e+00> : vector<128x8xf32>
    %14 = tpu.matmul %12, %13, %cst {dimension_numbers = #tpu.dot_dimension_numbers<[1], [0], [0], [1], [0, 0, 1, 1], [], []>} : vector<128x36xbf16>, vector<36x8xbf16>, vector<128x8xf32> -> vector<128x8xf32>
    %c0_5 = arith.constant 0 : index
    %c0_6 = arith.constant 0 : index
    %15 = vector.load %arg3[%c0_5, %c0_6] : memref<1x8xf32, #tpu.memory_space<vmem>>, vector<1x8xf32>
    %16 = vector.broadcast %15 : vector<1x8xf32> to vector<128x8xf32>
    %17 = arith.addf %14, %16 : vector<128x8xf32>
    %cst_7 = arith.constant 0.000000e+00 : f32
    %18 = vector.broadcast %cst_7 : f32 to vector<128x8xf32>
    %19 = arith.maximumf %17, %18 : vector<128x8xf32>
    %20 = vector.shape_cast %19 : vector<128x8xf32> to vector<8x16x8xf32>
    %c0_8 = arith.constant 0 : index
    %c0_9 = arith.constant 0 : index
    %c0_10 = arith.constant 0 : index
    %c0_11 = arith.constant 0 : index
    %21 = vector.load %arg4[%c0_8, %c0_9, %c0_10, %c0_11] : memref<1x8x16x8xf32, #tpu.memory_space<vmem>>, vector<1x8x16x8xf32>
    %22 = vector.shape_cast %21 : vector<1x8x16x8xf32> to vector<8x16x8xf32>
    %23 = vector.shape_cast %20 : vector<8x16x8xf32> to vector<1x8x16x8xf32>
    tpu.vector_store %arg4[%c0_8, %c0_9, %c0_10, %c0_11], %23 {strides = array<i32>} : memref<1x8x16x8xf32, #tpu.memory_space<vmem>>, vector<1x8x16x8xf32>,
    return
  }
  func.func @transform_0(%arg0: i32) -> (i32, i32, i32, i32) {
    %c0_i32 = arith.constant 0 : i32
    %c0_i32_0 = arith.constant 0 : i32
    %c0_i32_1 = arith.constant 0 : i32
    %c0_i32_2 = arith.constant 0 : i32
    return %arg0, %c0_i32, %c0_i32_0, %c0_i32_1 : i32, i32, i32, i32
  }
  func.func @transform_1(%arg0: i32) -> (i32, i32) {
    %c0_i32 = arith.constant 0 : i32
    %c0_i32_0 = arith.constant 0 : i32
    %c0_i32_1 = arith.constant 0 : i32
    return %c0_i32, %c0_i32_0 : i32, i32
  }
  func.func @transform_2(%arg0: i32) -> (i32, i32) {
    %c0_i32 = arith.constant 0 : i32
    %c0_i32_0 = arith.constant 0 : i32
    %c0_i32_1 = arith.constant 0 : i32
    return %c0_i32, %c0_i32_0 : i32, i32
  }
  func.func @transform_3(%arg0: i32) -> (i32, i32, i32, i32) {
    %c0_i32 = arith.constant 0 : i32
    %c0_i32_0 = arith.constant 0 : i32
    %c0_i32_1 = arith.constant 0 : i32
    %c0_i32_2 = arith.constant 0 : i32
    return %arg0, %c0_i32, %c0_i32_0, %c0_i32_1 : i32, i32, i32, i32
  }
}

</mosaic_0001>

<bundles_post_ra>
// kernel: conv_bn_act_pallas.1
= control target key start
LH: loop header
LB: loop body
LE: loop exit
PB: predicated region body
PF: predicated region fallthrough
CT: control target
= control target key end

     0   :  { %s1021_s12 = smov 0   ;;  %s1437_s0 = inlined_call_operand.vmem [shape: bf16[4,10,18,4], index: 0, kind: input, shape index: {}]   ;;  %s1438_s1 = inlined_call_operand.vmem [shape: bf16[36,8], index: 1, kind: input, shape index: {}]   ;;  %s1439_s2 = inlined_call_operand.vmem [shape: f32[1,8], index: 2, kind: input, shape index: {}]   ;;  %s1440_s3 = inlined_call_operand.vmem [shape: f32[4,8,16,8], index: 3, kind: output, shape index: {}]  }
   0x1 LB: > { %s879_s13 = sadd.s32 4294967295, %s991_s12   ;;  %p883_p0 = scmp.ge.s32.totalorder %s991_s12, 1  ;;  %s991_s12 = sphi %s1021_s12, %s13_s12  }
   0x2   : > { %p137_p1 = scmp.lt.s32.totalorder %s991_s12, 5 }
   0x4   : > { %p138_p2 = pnand %p883_p0, %p137_p1 }
   0x5   : > { %p161_p3 = scmp.lt.s32.totalorder (!%p138_p2), %s879_s13, 3  ;;  %s993_s18 = smov (!%p138_p2), 12  }
   0x6   : > { %141 = sbr.rel (%p138_p2) target bundleno = 448 (0x1c0), region = 32  ;;  %s994_s19 = smov (!%p138_p2), 8  }
   0x7   : > { %s995_s20 = smov (!%p138_p2), 4   ;;  %s996_s21 = smov (!%p138_p2), 20  }
   0x8   : > { %s997_s22 = smov (!%p138_p2), 16   ;;  %s998_s23 = smov (!%p138_p2), 24  }
   0x9   : > { %s999_s24 = smov (!%p138_p2), 28   ;;  %s1000_s25 = smov (!%p138_p2), 32  }
   0xb   : > { %s1442_s13 = smov (!%p161_p3, %s879_s13), 3  ;;  %vm379_vm0 = vcmask 1046528   ;;  %vm266_vm1 = vsmask.f32 7424  ;;  %vm739_vm2 = vcmask 1041408   ;;  %vm562_vm3 = vcmask 31744  }
   0xc   : > { %s967_s14 = smul.u32 120, %s1442_s13  ;;  %vm579_vm4 = vcmask 64512   ;;  %vm596_vm5 = vcmask 97280   ;;  %vm613_vm6 = vcmask 130048   ;;  %vm630_vm7 = vcmask 162816   ;;  %s945_s7 = sshll.u32 %s1442_s13, 7 }
   0xd   : > { %vm647_vm8 = vcmask 195584   ;;  %vm681_vm9 = vcmask 261120   ;;  %vm664_vm10 = vcmask 228352   ;;  %vm722_vm11 = vcmask 293888   ;;  %s1385_s10 = scalar_lea.vmem %s1440_s3, %s945_s7 }
   0xe   : > { %s1035_s17 = scalar_lea.vmem %s1437_s0, %s967_s14 }
   0xf   : > { %v1038_v0 = vld [vmem:[%s1035_s17 + $0x30] sm:$0xff]  ;;  %v186_v1 = vld [vmem:[%s1035_s17 + $0x38] sm:$0x1]  ;;  %v1042_v2 = vld [vmem:[%s1035_s17 + $0x48] sm:$0xff] }
  0x10   : > { %v254_v3 = vunpack.c.l.b16 %v186_v1  ;;  %v192_v4 = vld [vmem:[%s1035_s17 + $0x50] sm:$0x1]  ;;  %v316_v5 = vshrl.u32 %v1038_v0, 16  ;;  %v318_v6 = vshll.u32 %v1038_v0, 16  ;;  %v195_v8 = vld [vmem:[%s1035_s17 + $0x5c] sm:$0x1] }
  0x11   : > { %v256_v7 = vunpack.c.l.b16 %v192_v4  ;;  %v1049_v9 = vld [vmem:[%s1035_s17 + $0x3c] sm:$0xff]  ;;  %v392_v11 = vrot.slane %v1038_v0, 1  ;;  %v342_v12 = vshll.u32 %v1042_v2, 16  ;;  %v1054_v15 = vld [vmem:[%s1035_s17 + $0x54] sm:$0xff]  ;;  %v257_v18 = vunpack.c.l.b16 %v195_v8  ;;  %v189_v19 = vld [vmem:[%s1035_s17 + $0x44] sm:$0x1] }
  0x12   : > { %v262_v10 = vpack.c.b16 %v254_v3, %v254_v3  ;;  %v320_v13 = vrot.slane %v318_v6, 1  ;;  %433 = vrot.lane.b32.xlu2 %v1049_v9, %s993_s18  ;;  %v340_v21 = vshrl.u32 %v1042_v2, 16  ;;  %v354_v26 = vshll.u32 %v1054_v15, 16  ;;  %v180_v49 = vld [vmem:[%s1035_s17 + $0x20] sm:$0x1]  ;;  %v1099_v54 = vld [vmem:[%s1035_s17 + $0x18] sm:$0xff] }
  0x13   : > { %v264_v14 = vpack.c.b16 %v256_v7, %v256_v7  ;;  %v344_v24 = vrot.slane %v342_v12, 1  ;;  %v255_v27 = vunpack.c.l.b16 %v189_v19  ;;  %v398_v29 = vrot.slane %v1042_v2, 1  ;;  %v174_v52 = vld [vmem:[%s1035_s17 + $0x8] sm:$0x1]  ;;  %v1105_v57 = vld [vmem:[%s1035_s17] sm:$0xff] }
  0x14   : > { %v393_v16 = vrot.slane %v262_v10, 1  ;;  %v323_v17 = vshll.u32 %v262_v10, 16  ;;  %v321_v20 = vor.u32 %v320_v13, %v316_v5  ;;  %v265_v31 = vpack.c.b16 %v257_v18, %v257_v18  ;;  %v1114_v63 = vld [vmem:[%s1035_s17 + $0x60] sm:$0xff]  ;;  %v198_v4 = vld [vmem:[%s1035_s17 + $0x68] sm:$0x1] }
  0x15   : > { %v347_v25 = vshll.u32 %v264_v14, 16  ;;  %v399_v30 = vrot.slane %v264_v14, 1  ;;  %v345_v32 = vor.u32 %v344_v24, %v340_v21  ;;  %v263_v34 = vpack.c.b16 %v255_v27, %v255_v27 }
  0x16   : > { %v1061_v22 = vsel %vm379_vm0, %v392_v11, %v393_v16  ;;  %v325_v23 = vrot.slane %v323_v17, 1  ;;  %v330_v35 = vshll.u32 %v1049_v9, 16  ;;  %v352_v36 = vshrl.u32 %v1054_v15, 16 }
  0x17   : > { %412 = vrot.lane.b32.xlu1 %v1061_v22, %s994_s19  ;;  %v349_v33 = vrot.slane %v347_v25, 1  ;;  %v356_v37 = vrot.slane %v354_v26, 1  ;;  %v1077_v38 = vsel %vm379_vm0, %v398_v29, %v399_v30  ;;  %v359_v39 = vshll.u32 %v265_v31, 16  ;;  %v183_v30 = vld [vmem:[%s1035_s17 + $0x2c] sm:$0x1] }
  0x18   : > { %v1067_v28 = vsel %vm266_vm1, %v321_v20, %v325_v23  ;;  %v395_v40 = vrot.slane %v1049_v9, 1  ;;  %v396_v41 = vrot.slane %v263_v34, 1  ;;  %v328_v43 = vshrl.u32 %v1049_v9, 16 }
  0x19   : > { %371 = vrot.lane.b32.xlu0 %v1067_v28, %s995_s20  ;;  %v1081_v42 = vsel %vm266_vm1, %v345_v32, %v349_v33  ;;  %v332_v44 = vrot.slane %v330_v35, 1  ;;  %v335_v45 = vshll.u32 %v263_v34, 16  ;;  %v357_v46 = vor.u32 %v356_v37, %v352_v36  ;;  %v177_v33 = vld [vmem:[%s1035_s17 + $0x14] sm:$0x1]  ;;  %v1148_v37 = vld [vmem:[%s1035_s17 + $0x24] sm:$0xff] }
  0x1a   : > { %437 = vrot.lane.b32.xlu2 %v1054_v15, %s993_s18  ;;  %v361_v47 = vrot.slane %v359_v39, 1  ;;  %v1087_v48 = vsel %vm379_vm0, %v395_v40, %v396_v41  ;;  %v252_v55 = vunpack.c.l.b16 %v180_v49  ;;  %v250_v58 = vunpack.c.l.b16 %v174_v52 }
  0x1b   : > { %v333_v50 = vor.u32 %v332_v44, %v328_v43  ;;  %v337_v51 = vrot.slane %v335_v45, 1  ;;  %v294_v60 = vshll.u32 %v1099_v54, 16  ;;  %v401_v61 = vrot.slane %v1054_v15, 1  ;;  %v1154_v43 = vld [vmem:[%s1035_s17 + $0xc] sm:$0xff] }
  0x1c   : > { %v1096_v53 = vsel %vm266_vm1, %v357_v46, %v361_v47  ;;  %v260_v59 = vpack.c.b16 %v252_v55, %v252_v55  ;;  %v402_v62 = vrot.slane %v265_v31, 1  ;;  %v258_v1 = vpack.c.b16 %v250_v58, %v250_v58 }
  0x1d   : > { %v1102_v56 = vsel %vm266_vm1, %v333_v50, %v337_v51  ;;  %v270_v3 = vshll.u32 %v1105_v57, 16  ;;  %v292_v5 = vshrl.u32 %v1099_v54, 16  ;;  %v296_v6 = vrot.slane %v294_v60, 1 }
  0x1e   : > { %v299_v7 = vshll.u32 %v260_v59, 16  ;;  %v1122_v8 = vsel %vm379_vm0, %v401_v61, %v402_v62  ;;  %v268_v10 = vshrl.u32 %v1105_v57, 16  ;;  %v275_v12 = vshll.u32 %v258_v1, 16 }
  0x1f   : > { %416 = vrot.lane.b32.xlu1 %v1077_v38, %s994_s19  ;;  %v272_v11 = vrot.slane %v270_v3, 1  ;;  %v442_v13 = vunpack.c.l.b16 %v198_v4  ;;  %v297_v14 = vor.u32 %v296_v6, %v292_v5  ;;  %v447_v20 = vshll.u32 %v1114_v63, 16 }
  0x20   : > { %v301_v16 = vrot.slane %v299_v7, 1  ;;  %v277_v18 = vrot.slane %v275_v12, 1  ;;  %v386_v23 = vrot.slane %v1099_v54, 1  ;;  %v387_v24 = vrot.slane %v260_v59, 1 }
  0x21   : > { %375 = vrot.lane.b32.xlu0 %v1081_v42, %s995_s20  ;;  %v273_v17 = vor.u32 %v272_v11, %v268_v10  ;;  %v443_v19 = vpack.c.b16 %v442_v13, %v442_v13  ;;  %v445_v26 = vshrl.u32 %v1114_v63, 16  ;;  %v449_v27 = vrot.slane %v447_v20, 1 }
  0x22   : > { %483 = vrot.lane.b32.xlu2 %v1087_v48, %s996_s21  ;;  %v1133_v21 = vsel %vm266_vm1, %v297_v14, %v301_v16  ;;  %v380_v31 = vrot.slane %v1105_v57, 1  ;;  %v381_v32 = vrot.slane %v258_v1, 1  ;;  %v1144_v34 = vsel %vm379_vm0, %v386_v23, %v387_v24  ;;  %v955_v23 = vld [vmem:[%s1035_s17 + $0x6c] sm:$0xff] }
  0x23   : > { %v278_v25 = vsel %vm266_vm1, %v273_v17, %v277_v18  ;;  %v452_v29 = vshll.u32 %v443_v19, 16  ;;  %v450_v35 = vor.u32 %v449_v27, %v445_v26  ;;  %v253_v39 = vunpack.c.l.b16 %v183_v30 }
  0x24   : > { %v251_v40 = vunpack.c.l.b16 %v177_v33  ;;  %v382_v41 = vsel %vm379_vm0, %v380_v31, %v381_v32  ;;  %v306_v44 = vshll.u32 %v1148_v37, 16  ;;  %v472_v47 = vrot.slane %v1114_v63, 1 }
  0x25   : > { %v454_v36 = vrot.slane %v452_v29, 1  ;;  %v261_v46 = vpack.c.b16 %v253_v39, %v253_v39  ;;  %v473_v49 = vrot.slane %v443_v19, 1  ;;  %v282_v51 = vshll.u32 %v1154_v43, 16  ;;  %v201_v19 = vld [vmem:[%s1035_s17 + $0x74] sm:$0x1] }
  0x26   : > { %v259_v50 = vpack.c.b16 %v251_v40, %v251_v40  ;;  %v304_v52 = vshrl.u32 %v1148_v37, 16  ;;  %v308_v55 = vrot.slane %v306_v44, 1  ;;  %v280_v60 = vshrl.u32 %v1154_v43, 16 }
  0x27   : > { %468 = vrot.lane.b32.xlu1 %v1096_v53, %s997_s22  ;;  %v455_v45 = vsel %vm266_vm1, %v450_v35, %v454_v36  ;;  %v311_v58 = vshll.u32 %v261_v46, 16  ;;  %v474_v59 = vsel %vm379_vm0, %v472_v47, %v473_v49  ;;  %v284_v61 = vrot.slane %v282_v51, 1  ;;  %v956_v47 = vld [vmem:[%s1438_s1] sm:$0xff] }
  0x28   : > { %v287_v62 = vshll.u32 %v259_v50, 16  ;;  %v309_v1 = vor.u32 %v308_v55, %v304_v52  ;;  %v389_v10 = vrot.slane %v1148_v37, 1  ;;  %v390_v11 = vrot.slane %v261_v46, 1 }
  0x29   : > { %464 = vrot.lane.b32.xlu0 %v1102_v56, %s997_s22  ;;  %v313_v3 = vrot.slane %v311_v58, 1  ;;  %v285_v4 = vor.u32 %v284_v61, %v280_v60  ;;  %v383_v12 = vrot.slane %v1154_v43, 1  ;;  %v384_v13 = vrot.slane %v259_v50, 1 }
  0x2a   : > { %508 = vrot.lane.b32.xlu2 %v1114_v63, %s998_s23  ;;  %v289_v5 = vrot.slane %v287_v62, 1  ;;  %v1184_v14 = vsel %vm379_vm0, %v389_v10, %v390_v11  ;;  %v513_v20 = vunpack.c.l.b16 %v201_v19 }
  0x2b   : > { %v1169_v6 = vsel %vm266_vm1, %v309_v1, %v313_v3  ;;  %v1187_v16 = vsel %vm379_vm0, %v383_v12, %v384_v13 }
  0x2c   : > { %v290_v7 = vsel %vm266_vm1, %v285_v4, %v289_v5  ;;  %v514_v24 = vpack.c.b16 %v513_v20, %v513_v20 }
  0x2e   : > { %v523_v29 = vshll.u32 %v514_v24, 16  ;;  %v544_v50 = vrot.slane %v514_v24, 1 }
  0x2f   : > { %504 = vrot.lane.b32.xlu1 %v1042_v2, %s998_s23 }
  0x30   : > { %v525_v30 = vrot.slane %v523_v29, 1 }
  0x31   : > { %487 = vrot.lane.b32.xlu0 %v1122_v8, %s996_s21 }
  0x32   : > { %535 = vrot.lane.b32.xlu2 %v1081_v42, %s999_s24 }
  0x37   : > { %367 = vrot.lane.b32.xlu1 %v1133_v21, %s995_s20 }
  0x39   : > { %363 = vrot.lane.b32.xlu0 %v278_v25, %s995_s20  ;;  %v518_v25 = vshll.u32 %v955_v23, 16 }
  0x3a   : > { %408 = vrot.lane.b32.xlu2 %v1144_v34, %s994_s19 }
  0x3b   : > { %v520_v27 = vrot.slane %v518_v25, 1 }
  0x3f   : > { %404 = vrot.lane.b32.xlu1 %v382_v41, %s994_s19 }
  0x41   : > { %539 = vrot.lane.b32.xlu0 %v455_v45, %s999_s24 }
  0x42   : > { %425 = vrot.lane.b32.xlu2 %v1154_v43, %s993_s18 }
  0x47   : > { %558 = vrot.lane.b32.xlu1 %v474_v59, %s1000_s25 }
  0x49   : > { %554 = vrot.lane.b32.xlu0 %v1077_v38, %s1000_s25 }
  0x4a   : > { %460 = vrot.lane.b32.xlu2 %v1169_v6, %s997_s22 }
  0x4f   : > { %456 = vrot.lane.b32.xlu1 %v290_v7, %s997_s22 }
  0x51   : > { %429 = vrot.lane.b32.xlu0 %v1148_v37, %s993_s18 }
  0x52   : > { %496 = vrot.lane.b32.xlu2 %v1099_v54, %s998_s23 }
  0x57   : > { %479 = vrot.lane.b32.xlu1 %v1184_v14, %s996_s21 }
  0x59   : > { %475 = vrot.lane.b32.xlu0 %v1187_v16, %s996_s21 }
  0x5a   : > { %531 = vrot.lane.b32.xlu2 %v1067_v28, %s999_s24 }
  0x5f   : > { %527 = vrot.lane.b32.xlu1 %v1133_v21, %s999_s24 }
  0x61   : > { %500 = vrot.lane.b32.xlu0 %v1038_v0, %s998_s23 }
  0x62   : > { %373 = vrot.lane.b32.xlu2 %v1102_v56, %s995_s20 }
  0x67   : > { %550 = vrot.lane.b32.xlu1 %v1061_v22, %s1000_s25 }
  0x69   : > { %546 = vrot.lane.b32.xlu0 %v1144_v34, %s1000_s25 }
  0x6a   : > { %418 = vrot.lane.b32.xlu2 %v1122_v8, %s994_s19 }
  0x6c   : > { %v1207_v17 = vpop.permute.xlu2 %433 }
  0x6f   : > { %414 = vrot.lane.b32.xlu1 %v1087_v48, %s994_s19 }
  0x71   : > { %377 = vrot.lane.b32.xlu0 %v1096_v53, %s995_s20 }
  0x72   : > { %466 = vrot.lane.b32.xlu2 %v1081_v42, %s997_s22  ;;  %v516_v42 = vshrl.u32 %v955_v23, 16 }
  0x74   : > { %v1215_v18 = vpop.permute.xlu2 %437 }
  0x77   : > { %439 = vrot.lane.b32.xlu1 %v1114_v63, %s993_s18  ;;  %v521_v63 = vor.u32 %v520_v27, %v516_v42 }
  0x79   : > { %435 = vrot.lane.b32.xlu0 %v1042_v2, %s993_s18  ;;  %v526_v32 = vsel %vm266_vm1, %v521_v63, %v525_v30 }
  0x7a   : > { %489 = vrot.lane.b32.xlu2 %v474_v59, %s996_s21 }
  0x7c   : > { %v1224_v26 = vpop.permute.xlu2 %483 }
  0x7f   : > { %485 = vrot.lane.b32.xlu1 %v1077_v38, %s996_s21  ;;  %v702_v38 = vld [vmem:[%s1438_s1 + $0x10] sm:$0x3] }
  0x80   : > { %v716_v36 = vunpack.c.l.b16 %v702_v38 }
  0x81   : > { %470 = vrot.lane.b32.xlu0 %v455_v45, %s997_s22  ;;  %v957_v45 = vld [vmem:[%s1438_s1 + $0x8] sm:$0xff] }
  0x82   : > { %365 = vrot.lane.b32.xlu2 %v290_v7, %s995_s20  ;;  %v719_v40 = vpack.c.b16 %v716_v36, %v716_v36 }
  0x84   : > { %v1230_v31 = vpop.permute.xlu2 %508  ;;  %v741_v41 = vsel %vm739_vm2, %v719_v40, 0 }
  0x85   : > { %960 = vmatpush.bf16.msra.mxu3 %v741_v41  ;;  %959 = vmatpush.bf16.msra.mxu2 %v741_v41 }
  0x86   : > { %958 = vmatpush.bf16.msra.mxu1 %v741_v41  ;;  %748 = vmatpush.bf16.msra.mxu0 %v741_v41 }
  0x87   : > { %510 = vrot.lane.b32.xlu1 %v955_v23, %s998_s23 }
  0x89   : > { %v413_v33 = vpop.permute.xlu1 %412  ;;  %506 = vrot.lane.b32.xlu0 %v1054_v15, %s998_s23  ;;  %963 = vmatpush.bf16.msra.mxu3 %v957_v45 }
  0x8a   : > { %541 = vrot.lane.b32.xlu2 %v526_v32, %s999_s24  ;;  %962 = vmatpush.bf16.msra.mxu2 %v957_v45 }
  0x8b   : > { %v372_v35 = vpop.permute.xlu0 %371  ;;  %961 = vmatpush.bf16.msra.mxu1 %v957_v45  ;;  %749 = vmatpush.bf16.msra.mxu0 %v957_v45 }
  0x8c   : > { %v1240_v39 = vpop.permute.xlu2 %535  ;;  %v572_v1 = vsel %vm562_vm3, %v1038_v0, %v372_v35 }
  0x8d   : > { %966 = vmatpush.bf16.msra.mxu3 %v956_v47 }
  0x8e   : > { %965 = vmatpush.bf16.msra.mxu2 %v956_v47 }
  0x8f   : > { %537 = vrot.lane.b32.xlu1 %v1096_v53, %s999_s24  ;;  %964 = vmatpush.bf16.msra.mxu1 %v956_v47 }
  0x90   : > { %750 = vmatpush.bf16.msra.mxu0 %v956_v47 }
  0x91   : > { %v417_v44 = vpop.permute.xlu1 %416  ;;  %369 = vrot.lane.b32.xlu0 %v1169_v6, %s995_s20 }
  0x92   : > { %556 = vrot.lane.b32.xlu2 %v1122_v8, %s1000_s25  ;;  %v543_v8 = vrot.slane %v955_v23, 1 }
  0x93   : > { %v376_v46 = vpop.permute.xlu0 %375 }
  0x94   : > { %v1251_v53 = vpop.permute.xlu2 %408  ;;  %v545_v55 = vsel %vm379_vm0, %v543_v8, %v544_v50 }
  0x97   : > { %410 = vrot.lane.b32.xlu1 %v1184_v14, %s994_s19 }
  0x99   : > { %v469_v49 = vpop.permute.xlu1 %468  ;;  %406 = vrot.lane.b32.xlu0 %v1187_v16, %s994_s19 }
  0x9a   : > { %431 = vrot.lane.b32.xlu2 %v1038_v0, %s993_s18 }
  0x9b   : > { %v465_v51 = vpop.permute.xlu0 %464 }
  0x9c   : > { %v1262_v52 = vpop.permute.xlu2 %425 }
  0x9f   : > { %427 = vrot.lane.b32.xlu1 %v1099_v54, %s993_s18 }
  0xa1   : > { %v505_v58 = vpop.permute.xlu1 %504  ;;  %560 = vrot.lane.b32.xlu0 %v545_v55, %s1000_s25 }
  0xa2   : > { %477 = vrot.lane.b32.xlu2 %v1144_v34, %s996_s21  ;;  %v576_v34 = vsel %vm562_vm3, %v1042_v2, %v376_v46 }
  0xa3   : > { %v488_v59 = vpop.permute.xlu0 %487  ;;  %v593_v3 = vsel %vm579_vm4, %v576_v34, %v417_v44 }
  0xa4   : > { %v461_v60 = vpop.permute.xlu2 %460  ;;  %v610_v0 = vsel %vm596_vm5, %v593_v3, %v1215_v18 }
  0xa5   : > { %v627_v7 = vsel %vm613_vm6, %v610_v0, %v469_v49 }
  0xa6   : > { %v644_v11 = vsel %vm630_vm7, %v627_v7, %v488_v59 }
  0xa7   : > { %462 = vrot.lane.b32.xlu1 %v1067_v28, %s997_s22  ;;  %v589_v28 = vsel %vm579_vm4, %v572_v1, %v413_v33  ;;  %v661_v13 = vsel %vm647_vm8, %v644_v11, %v1230_v31 }
  0xa8   : > { %v606_v2 = vsel %vm596_vm5, %v589_v28, %v1207_v17 }
  0xa9   : > { %v368_v61 = vpop.permute.xlu1 %367  ;;  %458 = vrot.lane.b32.xlu0 %v1133_v21, %s997_s22  ;;  %v623_v10 = vsel %vm613_vm6, %v606_v2, %v465_v51 }
  0xaa   : > { %502 = vrot.lane.b32.xlu2 %v1049_v9, %s998_s23  ;;  %v568_v42 = vsel %vm562_vm3, %v1099_v54, %v368_v61 }
  0xab   : > { %v364_v62 = vpop.permute.xlu0 %363  ;;  %v585_v29 = vsel %vm579_vm4, %v568_v42, %v1251_v53 }
  0xac   : > { %v497_v21 = vpop.permute.xlu2 %496  ;;  %v564_v63 = vsel %vm562_vm3, %v1105_v57, %v364_v62 }
  0xaf   : > { %498 = vrot.lane.b32.xlu1 %v1148_v37, %s998_s23 }
  0xb1   : > { %v405_v4 = vpop.permute.xlu1 %404  ;;  %481 = vrot.lane.b32.xlu0 %v1061_v22, %s996_s21  ;;  %v640_v22 = vsel %vm630_vm7, %v623_v10, %v1224_v26 }
  0xb2   : > { %548 = vrot.lane.b32.xlu2 %v1184_v14, %s1000_s25  ;;  %v657_v12 = vsel %vm647_vm8, %v640_v22, %v505_v58  ;;  %v581_v32 = vsel %vm579_vm4, %v564_v63, %v405_v4 }
  0xb3   : > { %v540_v5 = vpop.permute.xlu0 %539  ;;  %v598_v38 = vsel %vm596_vm5, %v581_v32, %v1262_v52 }
  0xb4   : > { %v678_v14 = vsel %vm664_vm10, %v661_v13, %v540_v5  ;;  %v532_v18 = vpop.permute.xlu2 %531 }
  0xb7   : > { %533 = vrot.lane.b32.xlu1 %v1102_v56, %s999_s24  ;;  %v674_v56 = vsel %vm664_vm10, %v657_v12, %v1240_v39 }
  0xb9   : > { %v559_v16 = vpop.permute.xlu1 %558  ;;  %529 = vrot.lane.b32.xlu0 %v1169_v6, %s999_s24 }
  0xba   : > { %v695_v17 = vsel %vm681_vm9, %v678_v14, %v559_v16 }
  0xbb   : > { %941 = vmatmul.msk.bf16.vlgmr.msra.gmra.mxu3 %vm722_vm11, %v695_v17  ;;  %v555_v19 = vpop.permute.xlu0 %554 }
  0xbc   : > { %v691_v20 = vsel %vm681_vm9, %v674_v56, %v555_v19  ;;  %v374_v25 = vpop.permute.xlu2 %373 }
  0xbd   : > { %939 = vmatmul.msk.bf16.vlgmr.msra.gmra.mxu2 %vm722_vm11, %v691_v20  ;;  %v574_v61 = vsel %vm562_vm3, %v1049_v9, %v374_v25 }
  0xc1   : > { %v457_v23 = vpop.permute.xlu1 %456  ;;  %552 = vrot.lane.b32.xlu0 %v1087_v48, %s1000_s25 }
  0xc2   : > { %v615_v35 = vsel %vm613_vm6, %v598_v38, %v457_v23 }
  0xc3   : > { %v430_v24 = vpop.permute.xlu0 %429 }
  0xc4   : > { %v419_v27 = vpop.permute.xlu2 %418  ;;  %v602_v30 = vsel %vm596_vm5, %v585_v29, %v430_v24 }
  0xc5   : > { %v619_v33 = vsel %vm613_vm6, %v602_v30, %v461_v60 }
  0xc9   : > { %v480_v6 = vpop.permute.xlu1 %479 }
  0xca   : > { %v636_v54 = vsel %vm630_vm7, %v619_v33, %v480_v6 }
  0xcb   : > { %v476_v26 = vpop.permute.xlu0 %475 }
  0xcc   : > { %v632_v39 = vsel %vm630_vm7, %v615_v35, %v476_v26  ;;  %v467_v57 = vpop.permute.xlu2 %466 }
  0xcd   : > { %v649_v44 = vsel %vm647_vm8, %v632_v39, %v497_v21 }
  0xd1   : > { %v528_v31 = vpop.permute.xlu1 %527 }
  0xd2   : > { %v666_v46 = vsel %vm664_vm10, %v649_v44, %v528_v31 }
  0xd3   : > { %v501_v48 = vpop.permute.xlu0 %500 }
  0xd4   : > { %v653_v36 = vsel %vm647_vm8, %v636_v54, %v501_v48  ;;  %v490_v8 = vpop.permute.xlu2 %489 }
  0xd5   : > { %v670_v41 = vsel %vm664_vm10, %v653_v36, %v532_v18 }
  0xd9   : > { %v551_v40 = vpop.permute.xlu1 %550 }
  0xda   : > { %v687_v45 = vsel %vm681_vm9, %v670_v41, %v551_v40 }
  0xdb   : > { %937 = vmatmul.msk.bf16.vlgmr.msra.gmra.mxu1 %vm722_vm11, %v687_v45  ;;  %v547_v53 = vpop.permute.xlu0 %546 }
  0xdc   : > { %v683_v47 = vsel %vm681_vm9, %v666_v46, %v547_v53  ;;  %v366_v55 = vpop.permute.xlu2 %365  ;;  %v1378_v46 = vld [vmem:[%s1439_s2] ss:$0 sm:$0xff] }
  0xdd   : > { %935 = vmatmul.msk.bf16.vlgmr.msra.gmra.mxu0 %vm722_vm11, %v683_v47  ;;  %v566_v42 = vsel %vm562_vm3, %v1154_v43, %v366_v55 }
  0xe1   : > { %v415_v49 = vpop.permute.xlu1 %414 }
  0xe2   : > { %v591_v1 = vsel %vm579_vm4, %v574_v61, %v415_v49 }
  0xe3   : > { %v378_v50 = vpop.permute.xlu0 %377 }
  0xe4   : > { %v542_v60 = vpop.permute.xlu2 %541  ;;  %v578_v9 = vsel %vm562_vm3, %v1054_v15, %v378_v50 }
  0xe5   : > { %v595_v22 = vsel %vm579_vm4, %v578_v9, %v419_v27 }
  0xe9   : > { %v440_v51 = vpop.permute.xlu1 %439 }
  0xea   : > { %v612_v12 = vsel %vm596_vm5, %v595_v22, %v440_v51 }
  0xeb   : > { %v436_v52 = vpop.permute.xlu0 %435 }
  0xec   : > { %v608_v28 = vsel %vm596_vm5, %v591_v1, %v436_v52  ;;  %v557_v4 = vpop.permute.xlu2 %556 }
  0xed   : > { %v625_v3 = vsel %vm613_vm6, %v608_v28, %v467_v57 }
  0xf1   : > { %v486_v58 = vpop.permute.xlu1 %485 }
  0xf2   : > { %v642_v21 = vsel %vm630_vm7, %v625_v3, %v486_v58 }
  0xf3   : > { %v471_v59 = vpop.permute.xlu0 %470 }
  0xf4   : > { %v629_v14 = vsel %vm613_vm6, %v612_v12, %v471_v59  ;;  %v432_v16 = vpop.permute.xlu2 %431 }
  0xf5   : > { %v646_v17 = vsel %vm630_vm7, %v629_v14, %v490_v8 }
  0xf9   : > { %v511_v62 = vpop.permute.xlu1 %510 }
  0xfa   : > { %v663_v18 = vsel %vm647_vm8, %v646_v17, %v511_v62 }
  0xfb   : > { %v507_v34 = vpop.permute.xlu0 %506  ;;  %v680_v19 = vsel %vm664_vm10, %v663_v18, %v542_v60 }
  0xfc   : > { %v659_v0 = vsel %vm647_vm8, %v642_v21, %v507_v34  ;;  %v478_v15 = vpop.permute.xlu2 %477 }
 0x101   : > { %v538_v2 = vpop.permute.xlu1 %537 }
 0x102   : > { %v676_v5 = vsel %vm664_vm10, %v659_v0, %v538_v2 }
 0x103   : > { %v370_v7 = vpop.permute.xlu0 %369  ;;  %v693_v10 = vsel %vm681_vm9, %v676_v5, %v557_v4 }
 0x104   : > { %940 = vmatmul.msk.bf16.gmra.mxu2 %vm722_vm11, %v693_v10  ;;  %v503_v6 = vpop.permute.xlu2 %502  ;;  %v570_v31 = vsel %vm562_vm3, %v1148_v37, %v370_v7 }
 0x109   : > { %v411_v11 = vpop.permute.xlu1 %410 }
 0x10a   : > { %v587_v32 = vsel %vm579_vm4, %v570_v31, %v411_v11 }
 0x10b   : > { %v407_v13 = vpop.permute.xlu0 %406  ;;  %v604_v35 = vsel %vm596_vm5, %v587_v32, %v432_v16 }
 0x10c   : > { %v583_v27 = vsel %vm579_vm4, %v566_v42, %v407_v13  ;;  %v549_v33 = vpop.permute.xlu2 %548 }
 0x111   : > { %v428_v56 = vpop.permute.xlu1 %427 }
 0x112   : > { %v600_v29 = vsel %vm596_vm5, %v583_v27, %v428_v56 }
 0x113   : > { %v561_v20 = vpop.permute.xlu0 %560 }
 0x114   : > { %v697_v23 = vsel %vm681_vm9, %v680_v19, %v561_v20 }
 0x115   : > { %942 = vmatmul.msk.bf16.gmra.mxu3 %vm722_vm11, %v697_v23 }
 0x119   : > { %v463_v25 = vpop.permute.xlu1 %462 }
 0x11a   : > { %v621_v39 = vsel %vm613_vm6, %v604_v35, %v463_v25 }
 0x11b   : > { %v459_v24 = vpop.permute.xlu0 %458 }
 0x11c   : > { %v617_v30 = vsel %vm613_vm6, %v600_v29, %v459_v24 }
 0x11d   : > { %v634_v48 = vsel %vm630_vm7, %v617_v30, %v478_v15 }
 0x121   : > { %v499_v63 = vpop.permute.xlu1 %498 }
 0x122   : > { %v651_v38 = vsel %vm647_vm8, %v634_v48, %v499_v63 }
 0x123   : > { %v482_v26 = vpop.permute.xlu0 %481 }
 0x124   : > { %v638_v37 = vsel %vm630_vm7, %v621_v39, %v482_v26 }
 0x125   : > { %v655_v40 = vsel %vm647_vm8, %v638_v37, %v503_v6 }
 0x129   : > { %v534_v57 = vpop.permute.xlu1 %533 }
 0x12a   : > { %v672_v41 = vsel %vm664_vm10, %v655_v40, %v534_v57 }
 0x12b   : > { %v530_v54 = vpop.permute.xlu0 %529 }
 0x12c   : > { %v668_v43 = vsel %vm664_vm10, %v651_v38, %v530_v54 }
 0x12d   : > { %v685_v36 = vsel %vm681_vm9, %v668_v43, %v549_v33 }
 0x12e   : > { %936 = vmatmul.msk.bf16.gmra.mxu0 %vm722_vm11, %v685_v36 }
 0x133   : > { %v553_v44 = vpop.permute.xlu0 %552 }
 0x134   : > { %v689_v45 = vsel %vm681_vm9, %v672_v41, %v553_v44 }
 0x135   : > { %938 = vmatmul.msk.bf16.gmra.mxu1 %vm722_vm11, %v689_v45 }
 0x13e   : > { %v782_v53 = vpop.f32.mrf.mxu3 }
 0x13f   : > { %v783_v47 = vadd.f32 %v1378_v46, %v782_v53 }
 0x140   : > { %v772_v49 = vpop.f32.mrf.mxu2 }
 0x141   : > { %v804_v8 = vmax.f32 %v783_v47, 0.0  ;;  %v773_v50 = vadd.f32 %v1378_v46, %v772_v49 }
 0x143   : > { %820 = vst.msk [vmem:[%s1385_s10 + $0x60] sm:$0xff] %vm579_vm4, %v804_v8  ;;  %v800_v51 = vmax.f32 %v773_v50, 0.0 }
 0x145   : > { %816 = vst.msk [vmem:[%s1385_s10 + $0x40] sm:$0xff] %vm579_vm4, %v800_v51 }
 0x146   : > { %v784_v52 = vpop.f32.mrf.mxu3 }
 0x147   : > { %v785_v55 = vadd.f32 %v1378_v46, %v784_v52 }
 0x148   : > { %v774_v58 = vpop.f32.mrf.mxu2 }
 0x149   : > { %v805_v59 = vmax.f32 %v785_v55, 0.0  ;;  %v775_v60 = vadd.f32 %v1378_v46, %v774_v58 }
 0x14b   : > { %821 = vst.msk [vmem:[%s1385_s10 + $0x68] sm:$0xff] %vm579_vm4, %v805_v59  ;;  %v801_v61 = vmax.f32 %v775_v60, 0.0 }
 0x14d   : > { %817 = vst.msk [vmem:[%s1385_s10 + $0x48] sm:$0xff] %vm579_vm4, %v801_v61 }
 0x158   : > { %v762_v62 = vpop.f32.mrf.mxu1 }
 0x159   : > { %v763_v1 = vadd.f32 %v1378_v46, %v762_v62 }
 0x15a   : > { %v752_v34 = vpop.f32.mrf.mxu0 }
 0x15b   : > { %v796_v28 = vmax.f32 %v763_v1, 0.0  ;;  %v753_v3 = vadd.f32 %v1378_v46, %v752_v34 }
 0x15d   : > { %812 = vst.msk [vmem:[%s1385_s10 + $0x20] sm:$0xff] %vm579_vm4, %v796_v28  ;;  %v792_v21 = vmax.f32 %v753_v3, 0.0 }
 0x15f   : > { %808 = vst.msk [vmem:[%s1385_s10] sm:$0xff] %vm579_vm4, %v792_v21 }
 0x160   : > { %v764_v4 = vpop.f32.mrf.mxu1 }
 0x161   : > { %v765_v0 = vadd.f32 %v1378_v46, %v764_v4 }
 0x162   : > { %v754_v2 = vpop.f32.mrf.mxu0 }
 0x163   : > { %v797_v5 = vmax.f32 %v765_v0, 0.0  ;;  %v755_v7 = vadd.f32 %v1378_v46, %v754_v2 }
 0x165   : > { %813 = vst.msk [vmem:[%s1385_s10 + $0x28] sm:$0xff] %vm579_vm4, %v797_v5  ;;  %v793_v10 = vmax.f32 %v755_v7, 0.0 }
 0x167   : > { %809 = vst.msk [vmem:[%s1385_s10 + $0x8] sm:$0xff] %vm579_vm4, %v793_v10 }
 0x187   : > { %v777_v9 = vpop.f32.mrf.mxu2 }
 0x188   : > { %v778_v11 = vadd.f32 %v1378_v46, %v777_v9 }
 0x18a   : > { %v802_v22 = vmax.f32 %v778_v11, 0.0 }
 0x18c   : > { %818 = vst.msk [vmem:[%s1385_s10 + $0x50] sm:$0xff] %vm579_vm4, %v802_v22 }
 0x18f   : > { %v779_v12 = vpop.f32.mrf.mxu2 }
 0x190   : > { %v780_v13 = vadd.f32 %v1378_v46, %v779_v12 }
 0x192   : > { %v803_v14 = vmax.f32 %v780_v13, 0.0 }
 0x194   : > { %819 = vst.msk [vmem:[%s1385_s10 + $0x58] sm:$0xff] %vm579_vm4, %v803_v14 }
 0x198   : > { %v787_v16 = vpop.f32.mrf.mxu3 }
 0x199   : > { %v788_v17 = vadd.f32 %v1378_v46, %v787_v16 }
 0x19b   : > { %v806_v18 = vmax.f32 %v788_v17, 0.0 }
 0x19d   : > { %822 = vst.msk [vmem:[%s1385_s10 + $0x70] sm:$0xff] %vm579_vm4, %v806_v18 }
 0x1a0   : > { %v789_v56 = vpop.f32.mrf.mxu3 }
 0x1a1   : > { %v790_v19 = vadd.f32 %v1378_v46, %v789_v56 }
 0x1a3   : > { %v807_v20 = vmax.f32 %v790_v19, 0.0 }
 0x1a5   : > { %823 = vst.msk [vmem:[%s1385_s10 + $0x78] sm:$0xff] %vm579_vm4, %v807_v20 }
 0x1ab   : > { %v757_v23 = vpop.f32.mrf.mxu0 }
 0x1ac   : > { %v758_v15 = vadd.f32 %v1378_v46, %v757_v23 }
 0x1ae   : > { %v794_v24 = vmax.f32 %v758_v15, 0.0 }
 0x1b0   : > { %810 = vst.msk [vmem:[%s1385_s10 + $0x10] sm:$0xff] %vm579_vm4, %v794_v24 }
 0x1b2   : > { %v767_v25 = vpop.f32.mrf.mxu1 }
 0x1b3   : > { %v768_v6 = vadd.f32 %v1378_v46, %v767_v25  ;;  %v759_v26 = vpop.f32.mrf.mxu0 }
 0x1b4   : > { %v760_v42 = vadd.f32 %v1378_v46, %v759_v26 }
 0x1b5   : > { %v798_v27 = vmax.f32 %v768_v6, 0.0 }
 0x1b6   : > { %v795_v29 = vmax.f32 %v760_v42, 0.0 }
 0x1b7   : > { %814 = vst.msk [vmem:[%s1385_s10 + $0x30] sm:$0xff] %vm579_vm4, %v798_v27 }
 0x1b8   : > { %811 = vst.msk [vmem:[%s1385_s10 + $0x18] sm:$0xff] %vm579_vm4, %v795_v29 }
 0x1ba   : > { %v769_v63 = vpop.f32.mrf.mxu1 }
 0x1bb   : > { %v770_v30 = vadd.f32 %v1378_v46, %v769_v63 }
 0x1bd   : > { %v799_v31 = vmax.f32 %v770_v30, 0.0 }
 0x1bf   : > { %815 = vst.msk [vmem:[%s1385_s10 + $0x38] sm:$0xff] %vm579_vm4, %v799_v31 }
 0x1c0 PF: > { %s13_s12 = sadd.s32 1, %s991_s12  }
 0x1c1   : > { %p10_p4 = scmp.ge.s32.totalorder %s13_s12, 6  }
 0x1c3   :  { %12 = sbr.rel (!%p10_p4) target bundleno = 1 (0x1), region = 62 }

</bundles_post_ra>
